<compile_context>
chip_gen: v7x
topology: tpu7x:2x2x1
jax: 0.10.0
libtpu: 0.0.40
codegen_flags: <defaults>
</compile_context>

<pallas_src>
import jax
import jax.numpy as jnp
from jax.experimental import pallas as pl
from jax.experimental.pallas import tpu as pltpu


def _gating_kernel(x0_ref, x1_ref, x2_ref, x3_ref, w_ref, b_ref, o_ref):
    # x*_ref: [TM, E] batch tile of each expert's output (streamed).
    # w_ref:  [4, E, E] resident pre-split Linear weight (slab j multiplies expert j).
    # b_ref:  [1, E]    resident bias.
    # Equivalent to cat(x0..x3, axis=1) @ W  with W = [4E, E], accumulated in f32.
    acc = jnp.dot(x0_ref[...], w_ref[0], preferred_element_type=jnp.float32)
    acc += jnp.dot(x1_ref[...], w_ref[1], preferred_element_type=jnp.float32)
    acc += jnp.dot(x2_ref[...], w_ref[2], preferred_element_type=jnp.float32)
    acc += jnp.dot(x3_ref[...], w_ref[3], preferred_element_type=jnp.float32)
    acc += b_ref[...].astype(jnp.float32)            # broadcast over batch rows
    o_ref[...] = jax.nn.sigmoid(acc).astype(o_ref.dtype)   # EUP sigmoid, free slot


def gating_mechanism(experts_outputs, w, b, *, row_tile=4096, core_parallel=False):
    """MoE gating.

    experts_outputs: tuple of 4 arrays, each [B, E]
    w:               [4E, E]  (transposed relative to PyTorch's [E, 4E])
    b:               [E]
    returns          gates [B, E] = sigmoid(cat(experts) @ w + b)
    """
    assert len(experts_outputs) == 4, "GatingMechanism expects 4 expert outputs"
    B, E = experts_outputs[0].shape
    for x in experts_outputs:
        assert x.shape == (B, E), "all expert outputs must share the same shape"
    assert w.shape == (4 * E, E) and b.shape == (E,)
    out_dtype = experts_outputs[0].dtype

    # One-time parameter reshapes (negligible; no activation traffic):
    #   w4[j] == w[j*E:(j+1)*E, :]  so  cat(x) @ w == sum_j x_j @ w4[j].
    w4 = w.reshape(4, E, E)
    b2d = b.reshape(1, E)

    # Batch row tile: multiple of 8 sublanes, capped at row_tile.  For tiny
    # batches (B < 8) take the whole batch (full-dim blocks are always legal).
    if B >= 8:
        tm = max(8, (min(row_tile, B) // 8) * 8)
    else:
        tm = B

    # Ragged last block (B % tm != 0) is handled by Pallas' clipped block DMAs;
    # no jnp.pad of the activations is needed.
    grid = (pl.cdiv(B, tm),)

    # Note: at tm=4096, E=32, f32 the working set is ~5 MiB with double
    # buffering — well under the scoped-VMEM default on v5e/v6e/v7x, so no
    # vmem_limit_bytes override is required.
    batch_sem = pltpu.CORE_PARALLEL if core_parallel else "parallel"

    x_spec = pl.BlockSpec((tm, E), lambda i: (i, 0))     # streamed batch tiles
    out = pl.pallas_call(
        _gating_kernel,
        out_shape=jax.ShapeDtypeStruct((B, E), out_dtype),
        grid=grid,
        in_specs=[
            x_spec, x_spec, x_spec, x_spec,              # 4 expert outputs
            pl.BlockSpec((4, E, E), lambda i: (0, 0, 0)),  # W resident
            pl.BlockSpec((1, E), lambda i: (0, 0)),        # bias resident
        ],
        out_specs=pl.BlockSpec((tm, E), lambda i: (i, 0)),
        compiler_params=pltpu.CompilerParams(
            dimension_semantics=(batch_sem,),
        ),
    )(*experts_outputs, w4, b2d)

    return out


if __name__ == "__main__":
    # Small shapes consistent with the module: batch=8, embed_dim=32.
    B, E = 8, 32
    key = jax.random.PRNGKey(0)
    k_e, k_w, k_b = jax.random.split(key, 3)

    # Four expert outputs, each [B, E].
    experts = tuple(
        jax.random.normal(k, (B, E), dtype=jnp.float32)
        for k in jax.random.split(k_e, 4)
    )

    # Deterministic "Linear(4E -> E)" parameters, stored as W[4E, E] (transposed
    # relative to PyTorch's [E, 4E]) so the kernel computes combined @ W.
    bound = 1.0 / jnp.sqrt(4.0 * E)
    w = jax.random.uniform(k_w, (4 * E, E), dtype=jnp.float32,
                           minval=-bound, maxval=bound)
    bias = jax.random.uniform(k_b, (E,), dtype=jnp.float32,
                              minval=-bound, maxval=bound)

    gates = gating_mechanism(experts, w, bias)
    gates = jax.block_until_ready(gates)

    # Cross-check against a pure-JAX reference of the PyTorch forward.
    combined_ref = jnp.concatenate(experts, axis=1)
    ref = jax.nn.sigmoid(combined_ref @ w + bias)
    assert gates.shape == (B, E)
    assert jnp.allclose(gates, ref, atol=1e-5, rtol=1e-5)

    print("KERNEL_OK")
</pallas_src>

<mosaic_0001>
module attributes {stable_mosaic.version = 11 : i64} {
  func.func @_gating_kernel(%arg0: i32, %arg1: memref<8x32xf32, #tpu.memory_space<vmem>>, %arg2: memref<8x32xf32, #tpu.memory_space<vmem>>, %arg3: memref<8x32xf32, #tpu.memory_space<vmem>>, %arg4: memref<8x32xf32, #tpu.memory_space<vmem>>, %arg5: memref<4x32x32xf32, #tpu.memory_space<vmem>>, %arg6: memref<1x32xf32, #tpu.memory_space<vmem>>, %arg7: memref<8x32xf32, #tpu.memory_space<vmem>>) attributes {dimension_semantics = [#tpu.dimension_semantics<parallel>], iteration_bounds = array<i64: 1>, scalar_prefetch = 0 : i64, scratch_operands = 0 : i64, tpu.core_type = #tpu.core_type<tc>, window_params = [{transform_indices = @transform_0, window_bounds = array<i64: 8, 32>}, {transform_indices = @transform_1, window_bounds = array<i64: 8, 32>}, {transform_indices = @transform_2, window_bounds = array<i64: 8, 32>}, {transform_indices = @transform_3, window_bounds = array<i64: 8, 32>}, {pipeline_mode = #tpu.pipeline_mode<synchronous>, transform_indices = @transform_4, window_bounds = array<i64: 4, 32, 32>}, {pipeline_mode = #tpu.pipeline_mode<synchronous>, transform_indices = @transform_5, window_bounds = array<i64: 1, 32>}, {transform_indices = @transform_6, window_bounds = array<i64: 8, 32>}]} {
    %c0 = arith.constant 0 : index
    %c0_0 = arith.constant 0 : index
    %0 = vector.load %arg1[%c0, %c0_0] : memref<8x32xf32, #tpu.memory_space<vmem>>, vector<8x32xf32>
    %c0_1 = arith.constant 0 : index
    %c0_2 = arith.constant 0 : index
    %c0_3 = arith.constant 0 : index
    %1 = vector.load %arg5[%c0_1, %c0_2, %c0_3] : memref<4x32x32xf32, #tpu.memory_space<vmem>>, vector<1x32x32xf32>
    %2 = vector.shape_cast %1 : vector<1x32x32xf32> to vector<32x32xf32>
    %cst = arith.constant dense<0.000000e+00> : vector<8x32xf32>
    %3 = tpu.matmul %0, %2, %cst {dimension_numbers = #tpu.dot_dimension_numbers<[1], [0], [0], [1], [0, 0, 1, 1], [], []>} : vector<8x32xf32>, vector<32x32xf32>, vector<8x32xf32> -> vector<8x32xf32>
    %c0_4 = arith.constant 0 : index
    %c0_5 = arith.constant 0 : index
    %4 = vector.load %arg2[%c0_4, %c0_5] : memref<8x32xf32, #tpu.memory_space<vmem>>, vector<8x32xf32>
    %c1 = arith.constant 1 : index
    %c0_6 = arith.constant 0 : index
    %c0_7 = arith.constant 0 : index
    %5 = vector.load %arg5[%c1, %c0_6, %c0_7] : memref<4x32x32xf32, #tpu.memory_space<vmem>>, vector<1x32x32xf32>
    %6 = vector.shape_cast %5 : vector<1x32x32xf32> to vector<32x32xf32>
    %cst_8 = arith.constant dense<0.000000e+00> : vector<8x32xf32>
    %7 = tpu.matmul %4, %6, %cst_8 {dimension_numbers = #tpu.dot_dimension_numbers<[1], [0], [0], [1], [0, 0, 1, 1], [], []>} : vector<8x32xf32>, vector<32x32xf32>, vector<8x32xf32> -> vector<8x32xf32>
    %8 = arith.addf %3, %7 : vector<8x32xf32>
    %c0_9 = arith.constant 0 : index
    %c0_10 = arith.constant 0 : index
    %9 = vector.load %arg3[%c0_9, %c0_10] : memref<8x32xf32, #tpu.memory_space<vmem>>, vector<8x32xf32>
    %c2 = arith.constant 2 : index
    %c0_11 = arith.constant 0 : index
    %c0_12 = arith.constant 0 : index
    %10 = vector.load %arg5[%c2, %c0_11, %c0_12] : memref<4x32x32xf32, #tpu.memory_space<vmem>>, vector<1x32x32xf32>
    %11 = vector.shape_cast %10 : vector<1x32x32xf32> to vector<32x32xf32>
    %cst_13 = arith.constant dense<0.000000e+00> : vector<8x32xf32>
    %12 = tpu.matmul %9, %11, %cst_13 {dimension_numbers = #tpu.dot_dimension_numbers<[1], [0], [0], [1], [0, 0, 1, 1], [], []>} : vector<8x32xf32>, vector<32x32xf32>, vector<8x32xf32> -> vector<8x32xf32>
    %13 = arith.addf %8, %12 : vector<8x32xf32>
    %c0_14 = arith.constant 0 : index
    %c0_15 = arith.constant 0 : index
    %14 = vector.load %arg4[%c0_14, %c0_15] : memref<8x32xf32, #tpu.memory_space<vmem>>, vector<8x32xf32>
    %c3 = arith.constant 3 : index
    %c0_16 = arith.constant 0 : index
    %c0_17 = arith.constant 0 : index
    %15 = vector.load %arg5[%c3, %c0_16, %c0_17] : memref<4x32x32xf32, #tpu.memory_space<vmem>>, vector<1x32x32xf32>
    %16 = vector.shape_cast %15 : vector<1x32x32xf32> to vector<32x32xf32>
    %cst_18 = arith.constant dense<0.000000e+00> : vector<8x32xf32>
    %17 = tpu.matmul %14, %16, %cst_18 {dimension_numbers = #tpu.dot_dimension_numbers<[1], [0], [0], [1], [0, 0, 1, 1], [], []>} : vector<8x32xf32>, vector<32x32xf32>, vector<8x32xf32> -> vector<8x32xf32>
    %18 = arith.addf %13, %17 : vector<8x32xf32>
    %c0_19 = arith.constant 0 : index
    %c0_20 = arith.constant 0 : index
    %19 = vector.load %arg6[%c0_19, %c0_20] : memref<1x32xf32, #tpu.memory_space<vmem>>, vector<1x32xf32>
    %20 = vector.broadcast %19 : vector<1x32xf32> to vector<8x32xf32>
    %21 = arith.addf %18, %20 : vector<8x32xf32>
    %22 = arith.negf %21 : vector<8x32xf32>
    %23 = math.exp %22 : vector<8x32xf32>
    %cst_21 = arith.constant 1.000000e+00 : f32
    %24 = vector.broadcast %cst_21 : f32 to vector<8x32xf32>
    %25 = arith.addf %24, %23 : vector<8x32xf32>
    %26 = arith.divf %24, %25 : vector<8x32xf32>
    %c0_22 = arith.constant 0 : index
    %c0_23 = arith.constant 0 : index
    %27 = vector.load %arg7[%c0_22, %c0_23] : memref<8x32xf32, #tpu.memory_space<vmem>>, vector<8x32xf32>
    tpu.vector_store %arg7[%c0_22, %c0_23], %26 {strides = array<i32>} : memref<8x32xf32, #tpu.memory_space<vmem>>, vector<8x32xf32>,
    return
  }
  func.func @transform_0(%arg0: i32) -> (i32, i32) {
    %c0_i32 = arith.constant 0 : i32
    %c0_i32_0 = arith.constant 0 : i32
    return %arg0, %c0_i32 : i32, i32
  }
  func.func @transform_1(%arg0: i32) -> (i32, i32) {
    %c0_i32 = arith.constant 0 : i32
    %c0_i32_0 = arith.constant 0 : i32
    return %arg0, %c0_i32 : i32, i32
  }
  func.func @transform_2(%arg0: i32) -> (i32, i32) {
    %c0_i32 = arith.constant 0 : i32
    %c0_i32_0 = arith.constant 0 : i32
    return %arg0, %c0_i32 : i32, i32
  }
  func.func @transform_3(%arg0: i32) -> (i32, i32) {
    %c0_i32 = arith.constant 0 : i32
    %c0_i32_0 = arith.constant 0 : i32
    return %arg0, %c0_i32 : i32, i32
  }
  func.func @transform_4(%arg0: i32) -> (i32, i32, i32) {
    %c0_i32 = arith.constant 0 : i32
    %c0_i32_0 = arith.constant 0 : i32
    %c0_i32_1 = arith.constant 0 : i32
    %c0_i32_2 = arith.constant 0 : i32
    return %c0_i32, %c0_i32_0, %c0_i32_1 : i32, i32, i32
  }
  func.func @transform_5(%arg0: i32) -> (i32, i32) {
    %c0_i32 = arith.constant 0 : i32
    %c0_i32_0 = arith.constant 0 : i32
    %c0_i32_1 = arith.constant 0 : i32
    return %c0_i32, %c0_i32_0 : i32, i32
  }
  func.func @transform_6(%arg0: i32) -> (i32, i32) {
    %c0_i32 = arith.constant 0 : i32
    %c0_i32_0 = arith.constant 0 : i32
    return %arg0, %c0_i32 : i32, i32
  }
}

</mosaic_0001>

<bundles_post_ra>
// kernel: tpu_custom_call.1
= control target key start
LH: loop header
LB: loop body
LE: loop exit
PB: predicated region body
PF: predicated region fallthrough
CT: control target
= control target key end

     0   :  { %11 = vsyncpa [#allocation3], 0  ;;  %s776_s0 = inlined_call_operand.hbm [shape: f32[8,32], index: 0, kind: input, shape index: {}]   ;;  %s777_s1 = inlined_call_operand.hbm [shape: f32[8,32], index: 1, kind: input, shape index: {}]   ;;  %s778_s2 = inlined_call_operand.hbm [shape: f32[8,32], index: 2, kind: input, shape index: {}]   ;;  %s779_s3 = inlined_call_operand.vmem [shape: f32[8,32], index: 3, kind: input, shape index: {}]   ;;  %s780_s4 = inlined_call_operand.hbm [shape: f32[4,32,32], index: 4, kind: input, shape index: {}]   ;;  %s781_s5 = inlined_call_operand.vmem [shape: f32[1,32], index: 5, kind: input, shape index: {}]   ;;  %s782_s6 = inlined_call_operand.hbm [shape: f32[8,32], index: 6, kind: output, shape index: {}]  }
   0x1   :  { %12 = vsyncpa [#allocation6], 0 }
   0x2   :  { %13 = vsyncpa [#allocation9], 0 }
   0x3   :  { %14 = vsyncpa [#allocation4], 0  ;;  %s649_s21 = smov [#allocation5]   ;;  %s650_s23 = smov [#allocation2]  }
   0x4   :  { %s31_s22 = sshll.u32 %s649_s21, 4  ;;  %s21_s24 = sshll.u32 %s650_s23, 4  ;;  %s32_s22 = int_to_ptr.vmem [resolvable:$true] %s31_s22  ;;  %s22_s24 = int_to_ptr.vmem [resolvable:$true] %s21_s24 }
   0x5   :  { %s531_s27 = scalar_lea.hbm %s777_s1, 128 }
   0x6   :  { %p532_p0 = scmp.ne.s32.totalorder %s777_s1, %s531_s27  ;;  %p535_p1 = scmp.lt.u32.totalorder %s531_s27, %s777_s1 }
   0x8   :  { %p537_p2 = pnand %p535_p1, %p532_p0 }
   0xa   :  { %540 = shalt.err (!%p537_p2)
}
   0xb   :  { %s541_s8 = scalar_lea.vmem %s32_s22, 128  ;;  %p546_p4 = scmp.lt.s32.totalorder %s32_s22, %s32_s22 }
   0xc   :  { %p542_p3 = scmp.ne.s32.totalorder %s32_s22, %s541_s8  ;;  %p547_p5 = scmp.lt.s32.totalorder %s541_s8, %s541_s8 }
   0xe   :  { %p548_p6 = por %p547_p5, %p546_p4 }
  0x10   :  { %p549_p7 = pnand %p548_p6, %p542_p3 }
  0x12   :  { %552 = shalt.err (!%p549_p7)
}
  0x13   :  { %34 = dma.hbm_to_vmem [thread:$0]  %s777_s1, 128, %s32_s22, [#allocation6]  }
  0x14   :  { %s553_s13 = scalar_lea.hbm %s776_s0, 128 }
  0x15   :  { %p554_p8 = scmp.ne.s32.totalorder %s776_s0, %s553_s13  ;;  %p557_p9 = scmp.lt.u32.totalorder %s553_s13, %s776_s0 }
  0x17   :  { %p559_p10 = pnand %p557_p9, %p554_p8 }
  0x19   :  { %562 = shalt.err (!%p559_p10)
}
  0x1a   :  { %s563_s18 = scalar_lea.vmem %s22_s24, 128  ;;  %p568_p12 = scmp.lt.s32.totalorder %s22_s24, %s22_s24 }
  0x1b   :  { %p564_p11 = scmp.ne.s32.totalorder %s22_s24, %s563_s18  ;;  %p569_p13 = scmp.lt.s32.totalorder %s563_s18, %s563_s18 }
  0x1d   :  { %p570_p0 = por %p569_p13, %p568_p12 }
  0x1f   :  { %p571_p1 = pnand %p570_p0, %p564_p11 }
  0x21   :  { %574 = shalt.err (!%p571_p1)
}
  0x22   :  { %24 = dma.hbm_to_vmem [thread:$0]  %s776_s0, 128, %s22_s24, [#allocation3]  }
  0x23   :  { %s651_s20 = smov [#allocation7]   ;;  %s652_s22 = smov [#allocation8]  }
  0x24   :  { %s41_s21 = sshll.u32 %s651_s20, 4  ;;  %s52_s23 = sshll.u32 %s652_s22, 4  ;;  %s42_s21 = int_to_ptr.vmem [resolvable:$true] %s41_s21  ;;  %s718_s23 = int_to_ptr.vmem [resolvable:$true] %s52_s23 }
  0x25   :  { %s575_s27 = scalar_lea.hbm %s778_s2, 128 }
  0x26   :  { %p576_p2 = scmp.ne.s32.totalorder %s778_s2, %s575_s27  ;;  %p579_p3 = scmp.lt.u32.totalorder %s575_s27, %s778_s2 }
  0x28   :  { %p581_p4 = pnand %p579_p3, %p576_p2 }
  0x2a   :  { %584 = shalt.err (!%p581_p4)
}
  0x2b   :  { %s585_s0 = scalar_lea.vmem %s42_s21, 128  ;;  %p590_p6 = scmp.lt.s32.totalorder %s42_s21, %s42_s21 }
  0x2c   :  { %p586_p5 = scmp.ne.s32.totalorder %s42_s21, %s585_s0  ;;  %p591_p7 = scmp.lt.s32.totalorder %s585_s0, %s585_s0 }
  0x2e   :  { %p592_p8 = por %p591_p7, %p590_p6 }
  0x30   :  { %p593_p9 = pnand %p592_p8, %p586_p5 }
  0x32   :  { %596 = shalt.err (!%p593_p9)
}
  0x33   :  { %44 = dma.hbm_to_vmem [thread:$0]  %s778_s2, 128, %s42_s21, [#allocation6]  }
  0x34   :  { %s597_s11 = scalar_lea.hbm %s780_s4, 2048 }
  0x35   :  { %p598_p10 = scmp.ne.s32.totalorder %s780_s4, %s597_s11  ;;  %p601_p11 = scmp.lt.u32.totalorder %s597_s11, %s780_s4 }
  0x37   :  { %p603_p12 = pnand %p601_p11, %p598_p10 }
  0x39   :  { %606 = shalt.err (!%p603_p12)
}
  0x3a   :  { %s607_s16 = scalar_lea.vmem %s718_s23, 2048  ;;  %p612_p0 = scmp.lt.s32.totalorder %s718_s23, %s718_s23 }
  0x3b   :  { %p608_p13 = scmp.ne.s32.totalorder %s718_s23, %s607_s16  ;;  %p613_p1 = scmp.lt.s32.totalorder %s607_s16, %s607_s16 }
  0x3d   :  { %p614_p2 = por %p613_p1, %p612_p0 }
  0x3f   :  { %p615_p3 = pnand %p614_p2, %p608_p13 }
  0x41   :  { %618 = shalt.err (!%p615_p3)
}
  0x42   :  { %s653_s2 = smov 128   ;;  %s654_s17 = smov 8  }
  0x43   :  { %58 = dma.hbm_to_vmem [thread:$0]  %s780_s4, 2048, %s718_s23, [#allocation9], %s653_s2, %s653_s2, %s654_s17  }
  0x44   :  { %641 = dma.done.wait [#allocation3], 128  }
  0x45   :  { %642 = vsyncadd [#allocation3], 4294967168 }
  0x46   :  { %643 = dma.done.wait [#allocation6], 256  }
  0x47   :  { %644 = vsyncadd [#allocation6], 4294967040 }
  0x48   :  { %645 = dma.done.wait [#allocation9], 2048  }
  0x49   :  { %646 = vsyncadd [#allocation9], 4294965248  ;;  %v655_v0 = vmov 0.0|0.0   ;;  %vm656_vm0 = vmmov 0   ;;  %v657_v1 = vmov 0.0   ;;  %v80_v2 = vld [vmem:[#allocation8 + $0x20] sm:$0xff] }
  0x4a   :  { %493 = vmatprep.subr.bf16.mxu0 %v655_v0  ;;  %499 = vmatprep.subr.bf16.mxu1 %v655_v0  ;;  %v81_v3 = vld [vmem:[#allocation8 + $0x28] sm:$0xff]  ;;  %v74_v4 = vld [vmem:[#allocation8] sm:$0xff]  ;;  %v82_v7 = vld [vmem:[#allocation8 + $0x30] sm:$0xff]  ;;  %vm84_vm1 = vcmask 261120  }
  0x4b   :  { %457 = vmatprep.mubr.msk.f32.mxu0 %vm656_vm0, %v657_v1  ;;  %468 = vmatprep.mubr.msk.f32.mxu1 %vm656_vm0, %v657_v1  ;;  %v494_v5 = vpack.c.bf16 %v81_v3, %v80_v2  ;;  %v75_v6 = vld [vmem:[#allocation8 + $0x8] sm:$0xff]  ;;  %v83_v8 = vld [vmem:[#allocation8 + $0x38] sm:$0xff]  ;;  %v76_v10 = vld [vmem:[#allocation8 + $0x10] sm:$0xff] }
  0x4c   :  { %v500_v9 = vpack.c.bf16 %v75_v6, %v74_v4  ;;  %v77_v11 = vld [vmem:[#allocation8 + $0x18] sm:$0xff]  ;;  %v497_v12 = vpack.c.bf16 %v83_v8, %v82_v7  ;;  %v233_v14 = vld [vmem:[#allocation8 + $0x40] sm:$0xff]  ;;  %v234_v15 = vld [vmem:[#allocation8 + $0x48] sm:$0xff] }
  0x4d   :  { %495 = vmatpush3.bf16.msra.mxu0 %v494_v5  ;;  %v503_v13 = vpack.c.bf16 %v77_v11, %v76_v10  ;;  %v313_v16 = vld [vmem:[#allocation8 + $0x60] sm:$0xff]  ;;  %v314_v17 = vld [vmem:[#allocation8 + $0x68] sm:$0xff]  ;;  %v78_v18 = vld [vmem:[#allocation5] sm:$0xff]  ;;  %v506_v19 = vpack.c.bf16 %v234_v15, %v233_v14 }
  0x4e   :  { %501 = vmatpush3.bf16.msra.mxu1 %v500_v9  ;;  %496 = vmatprep.subr.bf16.mxu0 %v655_v0  ;;  %v73_v20 = vld [vmem:[#allocation2] sm:$0xff]  ;;  %v512_v21 = vpack.c.bf16 %v314_v17, %v313_v16  ;;  %v235_v22 = vld [vmem:[#allocation8 + $0x50] sm:$0xff]  ;;  %v236_v23 = vld [vmem:[#allocation8 + $0x58] sm:$0xff] }
  0x4f   :  { %502 = vmatprep.subr.bf16.mxu1 %v655_v0  ;;  %v315_v24 = vld [vmem:[#allocation8 + $0x70] sm:$0xff]  ;;  %v316_v25 = vld [vmem:[#allocation8 + $0x78] sm:$0xff]  ;;  %v509_v26 = vpack.c.bf16 %v236_v23, %v235_v22  ;;  %v311_v29 = vld [vmem:[%s779_s3] sm:$0xff]  ;;  %s658_s3 = smov [#allocation10]  }
  0x50   :  { %v515_v27 = vpack.c.bf16 %v316_v25, %v315_v24  ;;  %v231_v28 = vld [vmem:[#allocation7] sm:$0xff]  ;;  %v427_v39 = vld [vmem:[%s781_s5] ss:$0 sm:$0xff]  ;;  %s412_s22 = sshll.u32 %s658_s3, 4  ;;  %s413_s22 = int_to_ptr.vmem [resolvable:$true] %s412_s22 }
  0x51   :  { %498 = vmatpush3.bf16.msra.mxu0 %v497_v12  ;;  %s619_s23 = scalar_lea.vmem %s413_s22, 128  ;;  %p624_p5 = scmp.lt.s32.totalorder %s413_s22, %s413_s22 }
  0x52   :  { %504 = vmatpush3.bf16.msra.mxu1 %v503_v13  ;;  %505 = vmatprep.subr.bf16.mxu0 %v655_v0  ;;  %p620_p4 = scmp.ne.s32.totalorder %s413_s22, %s619_s23  ;;  %p625_p6 = scmp.lt.s32.totalorder %s619_s23, %s619_s23 }
  0x53   :  { %511 = vmatprep.subr.bf16.mxu1 %v655_v0 }
  0x54   :  { %458 = vmatmul.mubr.msk.f32.vlgmr.msra.gmra.mrb[0].mxu0 %vm84_vm1, %v78_v18  ;;  %p626_p7 = por %p625_p6, %p624_p5 }
  0x55   :  { %469 = vmatmul.mubr.msk.f32.vlgmr.msra.gmra.mrb[0].mxu1 %vm84_vm1, %v73_v20  ;;  %507 = vmatpush3.bf16.msra.mxu0 %v506_v19 }
  0x56   :  { %513 = vmatpush3.bf16.msra.mxu1 %v512_v21  ;;  %508 = vmatprep.subr.bf16.mxu0 %v655_v0  ;;  %p627_p8 = pnand %p626_p7, %p620_p4 }
  0x57   :  { %514 = vmatprep.subr.bf16.mxu1 %v655_v0  ;;  %479 = vmatprep.mubr.msk.f32.mxu0 %vm656_vm0, %v657_v1 }
  0x58   :  { %490 = vmatprep.mubr.msk.f32.mxu1 %vm656_vm0, %v657_v1 }
  0x59   :  { %510 = vmatpush3.bf16.msra.mxu0 %v509_v26 }
  0x5a   :  { %516 = vmatpush3.bf16.msra.mxu1 %v515_v27 }
  0x5c   :  { %480 = vmatmul.mubr.msk.f32.vlgmr.msra.gmra.mrb[2].mxu0 %vm84_vm1, %v231_v28 }
  0x5d   :  { %491 = vmatmul.mubr.msk.f32.vlgmr.msra.gmra.mrb[2].mxu1 %vm84_vm1, %v311_v29 }
 0x127   :  { %v154_v30 = vpop.f32.mrb[0].mxu0 }
 0x128   :  { %v459_v31 = vpop.f32.mrb[1].mxu0  ;;  %v227_v32 = vpop.f32.mrb[0].mxu1 }
 0x129   :  { %v228_v33 = vadd.f32 %v227_v32, %v154_v30  ;;  %v470_v34 = vpop.f32.mrb[1].mxu1 }
 0x12f   :  { %v306_v35 = vpop.f32.mrb[2].mxu0 }
 0x130   :  { %v310_v36 = vadd.f32 %v306_v35, %v228_v33  ;;  %v481_v37 = vpop.f32.mrb[3].mxu0  ;;  %v386_v38 = vpop.f32.mrb[2].mxu1 }
 0x131   :  { %v492_v40 = vpop.f32.mrb[3].mxu1 }
 0x132   :  { %v390_v41 = vadd.f32 %v386_v38, %v310_v36 }
 0x134   :  { %v398_v42 = vadd.f32 %v427_v39, %v390_v41 }
 0x136   :  { %v428_v43 = vmul.f32 -1.442695, %v398_v42 }
 0x138   :  { %527 = vpow2.f32 %v428_v43 }
 0x142   :  { %v528_v44 = vpop.eup %527 }
 0x143   :  { %v402_v45 = vadd.f32 1.0, %v528_v44 }
 0x145   :  { %529 = vrcp.f32 %v402_v45 }
 0x14f   :  { %v530_v46 = vpop.eup %529 }
 0x150   :  { %405 = vst.msk [vmem:[#allocation10] sm:$0xff] %vm84_vm1, %v530_v46 }
 0x151   :  { %630 = shalt.err (!%p627_p8)
}
 0x152   :  { %s631_s26 = scalar_lea.hbm %s782_s6, 128 }
 0x153   :  { %p632_p9 = scmp.ne.s32.totalorder %s782_s6, %s631_s26  ;;  %p635_p10 = scmp.lt.u32.totalorder %s631_s26, %s782_s6 }
 0x155   :  { %p637_p11 = pnand %p635_p10, %p632_p9 }
 0x157   :  { %640 = shalt.err (!%p637_p11)
}
 0x158   :  { %415 = dma.vmem_to_hbm [thread:$0]  %s413_s22, 128, %s782_s6, [#allocation4]  }
 0x159   :  { %647 = dma.done.wait [#allocation4], 128  }
 0x15a   :  { %648 = vsyncadd [#allocation4], 4294967168 }
 0x15b   :  { %419 = vsyncpa [#allocation3], 1 }
 0x15c   :  { %420 = vsyncpa [#allocation6], 1 }
 0x15d   :  { %421 = vsyncpa [#allocation9], 1 }
 0x15e   :  { %422 = vsyncpa [#allocation4], 1 }

</bundles_post_ra>
